<compile_context>
chip_gen: v5e
topology: v5e:2x2
jax: 0.10.0
libtpu: 0.0.40
codegen_flags: <defaults>
</compile_context>

<pallas_src>
import functools

import jax
import jax.numpy as jnp
from jax import lax
from jax.experimental import pallas as pl
from jax.experimental.pallas import tpu as pltpu

BN_EPS = 1e-5
LANE = 128      # minor (lane) tile
SUBLANE = 8     # second-minor (sublane) tile for f32

_VMEM_LIMIT_CACHE = None


def _vmem_limit_bytes():
    """Generation-aware scoped-VMEM limit: physical capacity minus 16 MiB headroom."""
    global _VMEM_LIMIT_CACHE
    if _VMEM_LIMIT_CACHE is None:
        try:
            cap = int(pltpu.get_tpu_info().vmem_capacity_bytes)
        except Exception:
            cap = 64 * 1024 * 1024   # conservative fallback (v7x-sized)
        _VMEM_LIMIT_CACHE = max(32 * 1024 * 1024, cap - 16 * 1024 * 1024)
    return _VMEM_LIMIT_CACHE


def _round_up(n, m):
    return ((n + m - 1) // m) * m


def _pad2d(a, rows, cols):
    r, c = a.shape
    return jnp.pad(a, ((0, rows - r), (0, cols - c)))


def _full_spec(shape):
    """Whole-array block with an empty grid (index_map takes no args)."""
    nd = len(shape)
    if nd == 2:
        return pl.BlockSpec(shape, lambda: (0, 0))
    if nd == 3:
        return pl.BlockSpec(shape, lambda: (0, 0, 0))
    raise ValueError(f"unsupported rank {nd}")


def _mlp_kernel(num_layers, batch_real, batch_pad, x_ref, *refs):
    """Fused MLP forward.

    refs layout:
      num_layers > 1 : (w0, wh[L-1,H,H], gb[2L,H], w_out, b_out, out)
      num_layers == 1: (w0,               gb[2L,H], w_out, b_out, out)
    gb rows: [gamma_0, beta_0, gamma_1, beta_1, ...]  (f32)
    Matmul operands (x, weights) are in `w_out.dtype` (bf16 fast path or f32);
    all BN statistics / affine / ReLU math is f32.
    """
    if num_layers > 1:
        w0_ref, wh_ref, gb_ref, w_out_ref, b_out_ref, out_ref = refs
    else:
        w0_ref, gb_ref, w_out_ref, b_out_ref, out_ref = refs
        wh_ref = None

    mm_dtype = w_out_ref.dtype
    inv_b = jnp.float32(1.0 / batch_real)

    if batch_pad != batch_real:
        row_ids = lax.broadcasted_iota(jnp.int32, (batch_pad, 1), 0)
        row_mask = (row_ids < batch_real).astype(jnp.float32)
    else:
        row_mask = None

    # For large batches, do the BN reductions on the otherwise-idle MXU instead
    # of the XLU (cross-sublane reduce).  Pure noise at tiny batches -> skip.
    use_mxu_stats = batch_pad >= 128
    if use_mxu_stats:
        ones_row = jnp.ones((1, batch_pad), jnp.float32)   # hoisted out of the loop

    h_mm = x_ref[...]                       # already in mm_dtype
    for l in range(num_layers):
        # Linear (MXU).  Hidden-layer bias elided: it cancels exactly under BN.
        w = w0_ref[...] if l == 0 else wh_ref[l - 1]
        z = jnp.dot(h_mm, w, preferred_element_type=jnp.float32)

        # BatchNorm1d, training-mode batch statistics (biased variance).
        # Padded batch rows are exactly zero entering the dot, so plain sums
        # only see real rows; divide by the real batch size.
        if use_mxu_stats:
            sum_z = jnp.dot(ones_row, z, preferred_element_type=jnp.float32)
            sum_z2 = jnp.dot(ones_row, z * z, preferred_element_type=jnp.float32)
        else:
            sum_z = jnp.sum(z, axis=0, keepdims=True)
            sum_z2 = jnp.sum(z * z, axis=0, keepdims=True)
        mean = sum_z * inv_b
        var = jnp.maximum(sum_z2 * inv_b - mean * mean, 0.0)

        gamma = gb_ref[2 * l: 2 * l + 1, :]          # (1, H_pad)
        beta = gb_ref[2 * l + 1: 2 * l + 2, :]       # (1, H_pad)
        s = gamma * lax.rsqrt(var + BN_EPS)          # per-feature scale
        t = beta - mean * s                          # per-feature offset

        # Fused BN affine + ReLU (f32 VPU ops).
        h = jnp.maximum(z * s + t, 0.0)
        if row_mask is not None:
            h = h * row_mask                         # keep padded rows at 0
        h_mm = h.astype(mm_dtype)                    # narrow only the MXU operand

    # Output linear (bias kept — no BN follows).  Lane-dense f32 store.
    out_ref[...] = (
        jnp.dot(h_mm, w_out_ref[...], preferred_element_type=jnp.float32)
        + b_out_ref[...]
    )


def prepare_params(params, num_layers, num_output, matmul_dtype=jnp.bfloat16):
    """One-time packing of parameters (call once, reuse every forward).

    params: flat list [W_l (in,out), b_l (1,out), gamma_l (1,out), beta_l (1,out)] * L
            + [W_out (in,out), b_out (1,out)].  Hidden dims uniform (int hidden_dim).
    Returns (packed dict of device arrays, meta dict of static ints).
    """
    num_input, hidden = params[0].shape
    in_pad = _round_up(num_input, SUBLANE)     # K only needs sublane alignment
    # NOTE: for very wide hidden layers on v6e/v7x prefer 256-multiples here
    # (256-wide MXU); 128 is optimal at the small widths this module uses.
    h_pad = _round_up(hidden, LANE)
    out_pad = _round_up(num_output, LANE)

    idx = 0
    w0 = None
    wh_list = []
    gb_rows = []
    for l in range(num_layers):
        w, _b, gamma, beta = params[idx], params[idx + 1], params[idx + 2], params[idx + 3]
        idx += 4
        # hidden-layer Linear bias _b intentionally dropped (cancels under BN)
        if l == 0:
            w0 = _pad2d(w.astype(jnp.float32), in_pad, h_pad).astype(matmul_dtype)
        else:
            wh_list.append(_pad2d(w.astype(jnp.float32), h_pad, h_pad).astype(matmul_dtype))
        gb_rows.append(_pad2d(gamma.reshape(1, -1).astype(jnp.float32), 1, h_pad))
        gb_rows.append(_pad2d(beta.reshape(1, -1).astype(jnp.float32), 1, h_pad))

    gb = jnp.concatenate(gb_rows, axis=0)                                   # (2L, h_pad) f32
    wh = jnp.stack(wh_list, axis=0) if wh_list else None                    # (L-1, h_pad, h_pad)
    w_out = _pad2d(params[idx].astype(jnp.float32), h_pad, out_pad).astype(matmul_dtype)
    b_out = _pad2d(params[idx + 1].reshape(1, -1).astype(jnp.float32), 1, out_pad)

    packed = dict(w0=w0, wh=wh, gb=gb, w_out=w_out, b_out=b_out)
    meta = dict(num_layers=num_layers, num_output=num_output, num_input=num_input,
                in_pad=in_pad, h_pad=h_pad, out_pad=out_pad)
    return packed, meta


@functools.partial(
    jax.jit,
    static_argnames=("num_layers", "num_output", "in_pad", "h_pad", "out_pad"),
)
def _mlp_forward_jit(x, w0, wh, gb, w_out, b_out, *, num_layers, num_output,
                     in_pad, h_pad, out_pad):
    B, nin = x.shape
    # Batch padded to a sublane multiple (16 for packed bf16, 8 for f32).
    row_tile = SUBLANE if w0.dtype == jnp.float32 else 16
    b_pad = _round_up(B, row_tile)

    # Per-call work on the hot path: pad + cast x only.
    x_p = _pad2d(x.astype(jnp.float32), b_pad, in_pad).astype(w0.dtype)

    args = [x_p, w0]
    if wh is not None:
        args.append(wh)
    args += [gb, w_out, b_out]

    kernel = functools.partial(_mlp_kernel, num_layers, B, b_pad)
    out_p = pl.pallas_call(
        kernel,
        out_shape=jax.ShapeDtypeStruct((b_pad, out_pad), jnp.float32),
        grid=(),
        in_specs=[_full_spec(a.shape) for a in args],
        out_specs=pl.BlockSpec((b_pad, out_pad), lambda: (0, 0)),
        compiler_params=pltpu.CompilerParams(vmem_limit_bytes=_vmem_limit_bytes()),
    )(*args)
    return out_p[:B, :num_output]


def mlp_forward(x, packed, meta):
    assert x.shape[1] == meta["num_input"], "feature-dim mismatch"
    return _mlp_forward_jit(
        x, packed["w0"], packed["wh"], packed["gb"], packed["w_out"], packed["b_out"],
        num_layers=meta["num_layers"], num_output=meta["num_output"],
        in_pad=meta["in_pad"], h_pad=meta["h_pad"], out_pad=meta["out_pad"])


def init_params(key, num_layers, hidden_dim, num_input, num_output):
    """Deterministic synthetic parameters (shapes mirror the PyTorch module)."""
    dims = [num_input] + [hidden_dim] * num_layers
    params = []
    for l in range(num_layers):
        key, k1, k2, k3, k4 = jax.random.split(key, 5)
        fan_in, fan_out = dims[l], dims[l + 1]
        w = jax.random.normal(k1, (fan_in, fan_out), jnp.float32) * (1.0 / jnp.sqrt(fan_in))
        b = 0.01 * jax.random.normal(k2, (1, fan_out), jnp.float32)
        gamma = 1.0 + 0.1 * jax.random.normal(k3, (1, fan_out), jnp.float32)
        beta = 0.1 * jax.random.normal(k4, (1, fan_out), jnp.float32)
        params += [w, b, gamma, beta]
    key, k1, k2 = jax.random.split(key, 3)
    w_out = jax.random.normal(k1, (dims[-1], num_output), jnp.float32) * (1.0 / jnp.sqrt(dims[-1]))
    b_out = 0.01 * jax.random.normal(k2, (1, num_output), jnp.float32)
    params += [w_out, b_out]
    return params


def mlp_reference(x, params, num_layers, matmul_dtype=jnp.float32):
    """Pure-JAX reference faithful to the PyTorch module (keeps hidden biases,
    two-pass BN statistics).  matmul_dtype narrows only the matmul operands."""
    prec = lax.Precision.HIGHEST if matmul_dtype == jnp.float32 else None

    def mm(a, b):
        return jnp.dot(a.astype(matmul_dtype), b.astype(matmul_dtype),
                       preferred_element_type=jnp.float32, precision=prec)

    h = x.astype(jnp.float32)
    idx = 0
    for _ in range(num_layers):
        w, b, g, beta = params[idx], params[idx + 1], params[idx + 2], params[idx + 3]
        idx += 4
        h = mm(h, w) + b
        mean = jnp.mean(h, axis=0, keepdims=True)
        var = jnp.mean((h - mean) ** 2, axis=0, keepdims=True)
        h = (h - mean) * lax.rsqrt(var + BN_EPS) * g + beta
        h = jnp.maximum(h, 0.0)
    return mm(h, params[idx]) + params[idx + 1]


if __name__ == "__main__":
    key = jax.random.PRNGKey(0)

    # Case 1: exact (f32) matmul path, sublane-aligned batch, 2 layers.
    num_layers, hidden_dim, num_input, num_output, batch = 2, 32, 16, 8, 8
    key, xk, pk = jax.random.split(key, 3)
    x = jax.random.normal(xk, (batch, num_input), jnp.float32)
    params = init_params(pk, num_layers, hidden_dim, num_input, num_output)
    packed, meta = prepare_params(params, num_layers, num_output, matmul_dtype=jnp.float32)
    out = jax.block_until_ready(mlp_forward(x, packed, meta))
    ref = mlp_reference(x, params, num_layers, matmul_dtype=jnp.float32)
    assert out.shape == (batch, num_output)
    assert jnp.allclose(out, ref, rtol=5e-3, atol=5e-3), "mismatch vs reference (f32 path)"

    # Case 2: bf16 MXU fast path, ragged batch (exercises padded-row mask), 3 layers.
    num_layers, hidden_dim, num_input, num_output, batch = 3, 32, 16, 8, 10
    key, xk, pk = jax.random.split(key, 3)
    x = jax.random.normal(xk, (batch, num_input), jnp.float32)
    params = init_params(pk, num_layers, hidden_dim, num_input, num_output)
    packed, meta = prepare_params(params, num_layers, num_output)   # bf16 default
    out = jax.block_until_ready(mlp_forward(x, packed, meta))
    ref_bf16 = mlp_reference(x, params, num_layers, matmul_dtype=jnp.bfloat16)
    ref_f32 = mlp_reference(x, params, num_layers, matmul_dtype=jnp.float32)
    assert out.shape == (batch, num_output)
    assert jnp.allclose(out, ref_bf16, rtol=1e-2, atol=1e-2), "mismatch vs bf16 reference"
    assert jnp.allclose(out, ref_f32, rtol=1e-1, atol=1e-1), "bf16 path drifted from f32 reference"

    # Case 3: single hidden block (no stacked hidden-weight input path).
    num_layers, hidden_dim, num_input, num_output, batch = 1, 32, 16, 8, 8
    key, xk, pk = jax.random.split(key, 3)
    x = jax.random.normal(xk, (batch, num_input), jnp.float32)
    params = init_params(pk, num_layers, hidden_dim, num_input, num_output)
    packed, meta = prepare_params(params, num_layers, num_output)
    out = jax.block_until_ready(mlp_forward(x, packed, meta))
    ref_bf16 = mlp_reference(x, params, num_layers, matmul_dtype=jnp.bfloat16)
    assert out.shape == (batch, num_output)
    assert jnp.allclose(out, ref_bf16, rtol=1e-2, atol=1e-2), "mismatch vs bf16 reference (1 layer)"

    print("KERNEL_OK")
</pallas_src>

<mosaic_0001>
module attributes {stable_mosaic.version = 11 : i64} {
  func.func @_mlp_kernel(%arg0: memref<8x16xf32, #tpu.memory_space<vmem>>, %arg1: memref<16x128xf32, #tpu.memory_space<vmem>>, %arg2: memref<1x128x128xf32, #tpu.memory_space<vmem>>, %arg3: memref<4x128xf32, #tpu.memory_space<vmem>>, %arg4: memref<128x128xf32, #tpu.memory_space<vmem>>, %arg5: memref<1x128xf32, #tpu.memory_space<vmem>>, %arg6: memref<8x128xf32, #tpu.memory_space<vmem>>) attributes {dimension_semantics = [], scalar_prefetch = 0 : i64, scratch_operands = 0 : i64, tpu.core_type = #tpu.core_type<tc>} {
    %c0 = arith.constant 0 : index
    %c0_0 = arith.constant 0 : index
    %0 = vector.load %arg0[%c0, %c0_0] : memref<8x16xf32, #tpu.memory_space<vmem>>, vector<8x16xf32>
    %c0_1 = arith.constant 0 : index
    %c0_2 = arith.constant 0 : index
    %1 = vector.load %arg1[%c0_1, %c0_2] : memref<16x128xf32, #tpu.memory_space<vmem>>, vector<16x128xf32>
    %cst = arith.constant dense<0.000000e+00> : vector<8x128xf32>
    %2 = tpu.matmul %0, %1, %cst {dimension_numbers = #tpu.dot_dimension_numbers<[1], [0], [0], [1], [0, 0, 1, 1], [], []>} : vector<8x16xf32>, vector<16x128xf32>, vector<8x128xf32> -> vector<8x128xf32>
    %cst_3 = arith.constant dense<0.000000e+00> : vector<128xf32>
    %3 = vector.multi_reduction <add>, %2, %cst_3 [0] : vector<8x128xf32> to vector<128xf32>
    %4 = vector.shape_cast %3 : vector<128xf32> to vector<1x128xf32>
    %5 = arith.mulf %2, %2 : vector<8x128xf32>
    %cst_4 = arith.constant dense<0.000000e+00> : vector<128xf32>
    %6 = vector.multi_reduction <add>, %5, %cst_4 [0] : vector<8x128xf32> to vector<128xf32>
    %7 = vector.shape_cast %6 : vector<128xf32> to vector<1x128xf32>
    %cst_5 = arith.constant 1.250000e-01 : f32
    %8 = vector.broadcast %cst_5 : f32 to vector<1x128xf32>
    %9 = arith.mulf %4, %8 : vector<1x128xf32>
    %cst_6 = arith.constant 1.250000e-01 : f32
    %10 = vector.broadcast %cst_6 : f32 to vector<1x128xf32>
    %11 = arith.mulf %7, %10 : vector<1x128xf32>
    %12 = arith.mulf %9, %9 : vector<1x128xf32>
    %13 = arith.subf %11, %12 : vector<1x128xf32>
    %cst_7 = arith.constant 0.000000e+00 : f32
    %14 = vector.broadcast %cst_7 : f32 to vector<1x128xf32>
    %15 = arith.maximumf %13, %14 : vector<1x128xf32>
    %c0_8 = arith.constant 0 : index
    %c0_9 = arith.constant 0 : index
    %16 = vector.load %arg3[%c0_8, %c0_9] : memref<4x128xf32, #tpu.memory_space<vmem>>, vector<1x128xf32>
    %c1 = arith.constant 1 : index
    %c0_10 = arith.constant 0 : index
    %17 = vector.load %arg3[%c1, %c0_10] : memref<4x128xf32, #tpu.memory_space<vmem>>, vector<1x128xf32>
    %cst_11 = arith.constant 9.99999974E-6 : f32
    %18 = vector.broadcast %cst_11 : f32 to vector<1x128xf32>
    %19 = arith.addf %15, %18 : vector<1x128xf32>
    %20 = math.rsqrt %19 : vector<1x128xf32>
    %21 = arith.mulf %16, %20 : vector<1x128xf32>
    %22 = arith.mulf %9, %21 : vector<1x128xf32>
    %23 = arith.subf %17, %22 : vector<1x128xf32>
    %24 = vector.broadcast %21 : vector<1x128xf32> to vector<8x128xf32>
    %25 = arith.mulf %2, %24 : vector<8x128xf32>
    %26 = vector.broadcast %23 : vector<1x128xf32> to vector<8x128xf32>
    %27 = arith.addf %25, %26 : vector<8x128xf32>
    %cst_12 = arith.constant 0.000000e+00 : f32
    %28 = vector.broadcast %cst_12 : f32 to vector<8x128xf32>
    %29 = arith.maximumf %27, %28 : vector<8x128xf32>
    %c0_13 = arith.constant 0 : index
    %c0_14 = arith.constant 0 : index
    %c0_15 = arith.constant 0 : index
    %30 = vector.load %arg2[%c0_13, %c0_14, %c0_15] : memref<1x128x128xf32, #tpu.memory_space<vmem>>, vector<1x128x128xf32>
    %31 = vector.shape_cast %30 : vector<1x128x128xf32> to vector<128x128xf32>
    %cst_16 = arith.constant dense<0.000000e+00> : vector<8x128xf32>
    %32 = tpu.matmul %29, %31, %cst_16 {dimension_numbers = #tpu.dot_dimension_numbers<[1], [0], [0], [1], [0, 0, 1, 1], [], []>} : vector<8x128xf32>, vector<128x128xf32>, vector<8x128xf32> -> vector<8x128xf32>
    %cst_17 = arith.constant dense<0.000000e+00> : vector<128xf32>
    %33 = vector.multi_reduction <add>, %32, %cst_17 [0] : vector<8x128xf32> to vector<128xf32>
    %34 = vector.shape_cast %33 : vector<128xf32> to vector<1x128xf32>
    %35 = arith.mulf %32, %32 : vector<8x128xf32>
    %cst_18 = arith.constant dense<0.000000e+00> : vector<128xf32>
    %36 = vector.multi_reduction <add>, %35, %cst_18 [0] : vector<8x128xf32> to vector<128xf32>
    %37 = vector.shape_cast %36 : vector<128xf32> to vector<1x128xf32>
    %cst_19 = arith.constant 1.250000e-01 : f32
    %38 = vector.broadcast %cst_19 : f32 to vector<1x128xf32>
    %39 = arith.mulf %34, %38 : vector<1x128xf32>
    %cst_20 = arith.constant 1.250000e-01 : f32
    %40 = vector.broadcast %cst_20 : f32 to vector<1x128xf32>
    %41 = arith.mulf %37, %40 : vector<1x128xf32>
    %42 = arith.mulf %39, %39 : vector<1x128xf32>
    %43 = arith.subf %41, %42 : vector<1x128xf32>
    %cst_21 = arith.constant 0.000000e+00 : f32
    %44 = vector.broadcast %cst_21 : f32 to vector<1x128xf32>
    %45 = arith.maximumf %43, %44 : vector<1x128xf32>
    %c2 = arith.constant 2 : index
    %c0_22 = arith.constant 0 : index
    %46 = vector.load %arg3[%c2, %c0_22] : memref<4x128xf32, #tpu.memory_space<vmem>>, vector<1x128xf32>
    %c3 = arith.constant 3 : index
    %c0_23 = arith.constant 0 : index
    %47 = vector.load %arg3[%c3, %c0_23] : memref<4x128xf32, #tpu.memory_space<vmem>>, vector<1x128xf32>
    %cst_24 = arith.constant 9.99999974E-6 : f32
    %48 = vector.broadcast %cst_24 : f32 to vector<1x128xf32>
    %49 = arith.addf %45, %48 : vector<1x128xf32>
    %50 = math.rsqrt %49 : vector<1x128xf32>
    %51 = arith.mulf %46, %50 : vector<1x128xf32>
    %52 = arith.mulf %39, %51 : vector<1x128xf32>
    %53 = arith.subf %47, %52 : vector<1x128xf32>
    %54 = vector.broadcast %51 : vector<1x128xf32> to vector<8x128xf32>
    %55 = arith.mulf %32, %54 : vector<8x128xf32>
    %56 = vector.broadcast %53 : vector<1x128xf32> to vector<8x128xf32>
    %57 = arith.addf %55, %56 : vector<8x128xf32>
    %cst_25 = arith.constant 0.000000e+00 : f32
    %58 = vector.broadcast %cst_25 : f32 to vector<8x128xf32>
    %59 = arith.maximumf %57, %58 : vector<8x128xf32>
    %c0_26 = arith.constant 0 : index
    %c0_27 = arith.constant 0 : index
    %60 = vector.load %arg4[%c0_26, %c0_27] : memref<128x128xf32, #tpu.memory_space<vmem>>, vector<128x128xf32>
    %cst_28 = arith.constant dense<0.000000e+00> : vector<8x128xf32>
    %61 = tpu.matmul %59, %60, %cst_28 {dimension_numbers = #tpu.dot_dimension_numbers<[1], [0], [0], [1], [0, 0, 1, 1], [], []>} : vector<8x128xf32>, vector<128x128xf32>, vector<8x128xf32> -> vector<8x128xf32>
    %c0_29 = arith.constant 0 : index
    %c0_30 = arith.constant 0 : index
    %62 = vector.load %arg5[%c0_29, %c0_30] : memref<1x128xf32, #tpu.memory_space<vmem>>, vector<1x128xf32>
    %63 = vector.broadcast %62 : vector<1x128xf32> to vector<8x128xf32>
    %64 = arith.addf %61, %63 : vector<8x128xf32>
    %c0_31 = arith.constant 0 : index
    %c0_32 = arith.constant 0 : index
    %65 = vector.load %arg6[%c0_31, %c0_32] : memref<8x128xf32, #tpu.memory_space<vmem>>, vector<8x128xf32>
    tpu.vector_store %arg6[%c0_31, %c0_32], %64 {strides = array<i32>} : memref<8x128xf32, #tpu.memory_space<vmem>>, vector<8x128xf32>,
    return
  }
}

</mosaic_0001>

<bundles_post_ra>
// kernel: _mlp_forward_jit.1
= control target key start
LH: loop header
LB: loop body
LE: loop exit
PB: predicated region body
PF: predicated region fallthrough
CT: control target
= control target key end

     0   :  { %11 = vsyncpa [#allocation3], 0  ;;  %s529_s0 = inlined_call_operand.hbm [shape: f32[8,16], index: 0, kind: input, shape index: {}]   ;;  %s530_s1 = inlined_call_operand.hbm [shape: f32[16,128], index: 1, kind: input, shape index: {}]   ;;  %s531_s2 = inlined_call_operand.hbm [shape: f32[1,128,128], index: 2, kind: input, shape index: {}]   ;;  %s532_s3 = inlined_call_operand.hbm [shape: f32[4,128], index: 3, kind: input, shape index: {}]   ;;  %s533_s4 = inlined_call_operand.hbm [shape: f32[128,128], index: 4, kind: input, shape index: {}]   ;;  %s534_s5 = inlined_call_operand.vmem [shape: f32[1,128], index: 5, kind: input, shape index: {}]   ;;  %s535_s6 = inlined_call_operand.hbm [shape: f32[8,128], index: 6, kind: output, shape index: {}]  }
   0x1   :  { %12 = vsyncpa [#allocation6], 0 }
   0x2   :  { %13 = vsyncpa [#allocation9], 0  ;;  %s30_s23 = sshll.u32 %s530_s1, 4  ;;  %s31_s23 = int_to_ptr.hbm [resolvable:$true] %s30_s23 }
   0x3   :  { %14 = vsyncpa [#allocation4], 0  ;;  %s465_s24 = smov [#allocation5]   ;;  %s57_s28 = sshll.u32 %s532_s3, 4  ;;  %s58_s28 = int_to_ptr.hbm [resolvable:$true] %s57_s28 }
   0x4   :  { %s32_s25 = sshll.u32 %s465_s24, 4  ;;  %s466_s29 = smov 128   ;;  %s33_s25 = int_to_ptr.vmem [resolvable:$true] %s32_s25 }
   0x5   :  { %s467_s30 = smov 8   ;;  %s468_s7 = smov [#allocation8]  }
   0x6   :  { %38 = dma.hbm_to_vmem [thread:$0]  %s31_s23, 256, %s33_s25, [#allocation6], %s466_s29, %s466_s29, %s467_s30  }
   0x7   :  { %s59_s8 = sshll.u32 %s468_s7, 4  ;;  %s20_s11 = sshll.u32 %s529_s0, 4  ;;  %s60_s8 = int_to_ptr.vmem [resolvable:$true] %s59_s8  ;;  %s21_s11 = int_to_ptr.hbm [resolvable:$true] %s20_s11 }
   0x8   :  { %62 = dma.hbm_to_vmem [thread:$0]  %s58_s28, 64, %s60_s8, [#allocation9]  }
   0x9   :  { %s43_s13 = sshll.u32 %s531_s2, 4  ;;  %s469_s14 = smov [#allocation2]   ;;  %s44_s13 = int_to_ptr.hbm [resolvable:$true] %s43_s13 }
   0xa   :  { %s22_s15 = sshll.u32 %s469_s14, 4  ;;  %s470_s3 = smov [#allocation7]   ;;  %s23_s15 = int_to_ptr.vmem [resolvable:$true] %s22_s15 }
   0xb   :  { %25 = dma.hbm_to_vmem [thread:$0]  %s21_s11, 128, %s23_s15, [#allocation3]  }
   0xc   :  { %s45_s16 = sshll.u32 %s470_s3, 4  ;;  %s67_s19 = sshll.u32 %s533_s4, 4  ;;  %s46_s16 = int_to_ptr.vmem [resolvable:$true] %s45_s16  ;;  %s68_s19 = int_to_ptr.hbm [resolvable:$true] %s67_s19 }
   0xd   :  { %51 = dma.hbm_to_vmem [thread:$0]  %s44_s13, 2048, %s46_s16, [#allocation6], %s466_s29, %s466_s29, %s467_s30  }
   0xe   :  { %s471_s0 = smov [#allocation10]  }
   0xf   :  { %s69_s20 = sshll.u32 %s471_s0, 4  ;;  %s70_s20 = int_to_ptr.vmem [resolvable:$true] %s69_s20 }
  0x10   :  { %75 = dma.hbm_to_vmem [thread:$0]  %s68_s19, 2048, %s70_s20, [#allocation9], %s466_s29, %s466_s29, %s467_s30  }
  0x11   :  { %457 = dma.done.wait [#allocation3], 128  }
  0x12   :  { %458 = vsyncadd [#allocation3], 4294967168 }
  0x13   :  { %459 = dma.done.wait [#allocation6], 2304  }
  0x14   :  { %460 = vsyncadd [#allocation6], 4294964992 }
  0x15   :  { %461 = dma.done.wait [#allocation9], 2112  }
  0x16   :  { %462 = vsyncadd [#allocation9], 4294965184  ;;  %v100_v0 = vld [vmem:[#allocation5 + $0x8] sm:$0xff]  ;;  %v99_v1 = vld [vmem:[#allocation5] sm:$0xff]  ;;  %vm101_vm0 = vcmask 130048   ;;  %s472_s21 = smov [#allocation11]  }
  0x17   :  { %119 = vmatpush.msra.mxu0 %v100_v0  ;;  %v98_v2 = vld [vmem:[#allocation2] sm:$0xff]  ;;  %v179_v3 = vld [vmem:[#allocation7 + $0x78] sm:$0xff]  ;;  %v178_v4 = vld [vmem:[#allocation7 + $0x70] sm:$0xff]  ;;  %s285_s22 = sshll.u32 %s472_s21, 4  ;;  %s287_s25 = sshll.u32 %s535_s6, 4  ;;  %s286_s22 = int_to_ptr.vmem [resolvable:$true] %s285_s22  ;;  %s288_s25 = int_to_ptr.hbm [resolvable:$true] %s287_s25 }
  0x18   :  { %180 = vmatpush.msra.mxu1 %v179_v3  ;;  %v177_v5 = vld [vmem:[#allocation7 + $0x68] sm:$0xff]  ;;  %v176_v6 = vld [vmem:[#allocation7 + $0x60] sm:$0xff]  ;;  %v175_v7 = vld [vmem:[#allocation7 + $0x58] sm:$0xff] }
  0x19   :  { %120 = vmatpush.msra.mxu0 %v99_v1  ;;  %v174_v8 = vld [vmem:[#allocation7 + $0x50] sm:$0xff]  ;;  %v173_v12 = vld [vmem:[#allocation7 + $0x48] sm:$0xff]  ;;  %v172_v15 = vld [vmem:[#allocation7 + $0x40] sm:$0xff] }
  0x1a   :  { %299 = vmatmul.msk.f32.vlgmr.msra.gmra.mxu0 %vm101_vm0, %v98_v2  ;;  %181 = vmatpush.msra.mxu1 %v178_v4  ;;  %v171_v18 = vld [vmem:[#allocation7 + $0x38] sm:$0xff]  ;;  %v170_v21 = vld [vmem:[#allocation7 + $0x30] sm:$0xff]  ;;  %v169_v24 = vld [vmem:[#allocation7 + $0x28] sm:$0xff] }
  0x1b   :  { %v168_v27 = vld [vmem:[#allocation7 + $0x20] sm:$0xff]  ;;  %v167_v30 = vld [vmem:[#allocation7 + $0x18] sm:$0xff]  ;;  %v166_v31 = vld [vmem:[#allocation7 + $0x10] sm:$0xff] }
  0x1c   :  { %182 = vmatpush.msra.mxu1 %v177_v5  ;;  %v165_v34 = vld [vmem:[#allocation7 + $0x8] sm:$0xff]  ;;  %v164_v36 = vld [vmem:[#allocation7] sm:$0xff]  ;;  %v253_v57 = vld [vmem:[#allocation10 + $0x70] sm:$0xff] }
  0x1d   :  { %v143_v44 = vld [vmem:[#allocation8] sm:$0x1]  ;;  %v144_v48 = vld [vmem:[#allocation8 + $0x1] sm:$0x1]  ;;  %v252_v58 = vld [vmem:[#allocation10 + $0x68] sm:$0xff] }
  0x1e   :  { %183 = vmatpush.msra.mxu1 %v176_v6  ;;  %v254_v56 = vld [vmem:[#allocation10 + $0x78] sm:$0xff]  ;;  %v251_v59 = vld [vmem:[#allocation10 + $0x60] sm:$0xff]  ;;  %v249_v61 = vld [vmem:[#allocation10 + $0x50] sm:$0xff] }
  0x1f   :  { %259 = vmatpush.msra.mxu2 %v254_v56  ;;  %v250_v60 = vld [vmem:[#allocation10 + $0x58] sm:$0xff]  ;;  %v248_v1 = vld [vmem:[#allocation10 + $0x48] sm:$0xff]  ;;  %v247_v4 = vld [vmem:[#allocation10 + $0x40] sm:$0xff] }
  0x20   :  { %184 = vmatpush.msra.mxu1 %v175_v7  ;;  %v246_v7 = vld [vmem:[#allocation10 + $0x38] sm:$0xff] }
  0x21   :  { %260 = vmatpush.msra.mxu2 %v253_v57 }
  0x22   :  { %185 = vmatpush.msra.mxu1 %v174_v8 }
  0x23   :  { %261 = vmatpush.msra.mxu2 %v252_v58 }
  0x24   :  { %186 = vmatpush.msra.mxu1 %v173_v12 }
  0x25   :  { %262 = vmatpush.msra.mxu2 %v251_v59 }
  0x26   :  { %187 = vmatpush.msra.mxu1 %v172_v15 }
  0x27   :  { %263 = vmatpush.msra.mxu2 %v250_v60 }
  0x28   :  { %188 = vmatpush.msra.mxu1 %v171_v18 }
  0x29   :  { %264 = vmatpush.msra.mxu2 %v249_v61 }
  0x2a   :  { %189 = vmatpush.msra.mxu1 %v170_v21 }
  0x2b   :  { %265 = vmatpush.msra.mxu2 %v248_v1 }
  0x2c   :  { %190 = vmatpush.msra.mxu1 %v169_v24 }
  0x2d   :  { %266 = vmatpush.msra.mxu2 %v247_v4 }
  0x2e   :  { %191 = vmatpush.msra.mxu1 %v168_v27 }
  0x2f   :  { %267 = vmatpush.msra.mxu2 %v246_v7 }
  0x30   :  { %192 = vmatpush.msra.mxu1 %v167_v30 }
  0x32   :  { %193 = vmatpush.msra.mxu1 %v166_v31 }
  0x34   :  { %194 = vmatpush.msra.mxu1 %v165_v34 }
  0x36   :  { %195 = vmatpush.msra.mxu1 %v164_v36 }
  0x97   :  { %v122_v9 = vpop.f32.mrf.mxu0 }
  0x98   :  { %v125_v10 = vrot.slane %v122_v9, 4  ;;  %v131_v11 = vmul.f32 %v122_v9, %v122_v9 }
  0x9a   :  { %v126_v13 = vadd.f32 %v125_v10, %v122_v9  ;;  %v132_v14 = vrot.slane %v131_v11, 4  ;;  %v245_v10 = vld [vmem:[#allocation10 + $0x30] sm:$0xff] }
  0x9b   :  { %268 = vmatpush.msra.mxu2 %v245_v10 }
  0x9c   :  { %v127_v16 = vrot.slane %v126_v13, 2  ;;  %v133_v17 = vadd.f32 %v132_v14, %v131_v11 }
  0x9e   :  { %v128_v19 = vadd.f32 %v127_v16, %v126_v13  ;;  %v134_v20 = vrot.slane %v133_v17, 2  ;;  %v244_v13 = vld [vmem:[#allocation10 + $0x28] sm:$0xff]  ;;  %v243_v16 = vld [vmem:[#allocation10 + $0x20] sm:$0xff] }
  0x9f   :  { %269 = vmatpush.msra.mxu2 %v244_v13 }
  0xa0   :  { %v129_v22 = vrot.slane %v128_v19, 1  ;;  %v135_v23 = vadd.f32 %v134_v20, %v133_v17  ;;  %v241_v20 = vld [vmem:[#allocation10 + $0x10] sm:$0xff] }
  0xa1   :  { %270 = vmatpush.msra.mxu2 %v243_v16 }
  0xa2   :  { %v130_v25 = vadd.f32 %v129_v22, %v128_v19  ;;  %v136_v26 = vrot.slane %v135_v23, 1  ;;  %v242_v19 = vld [vmem:[#allocation10 + $0x18] sm:$0xff] }
  0xa3   :  { %271 = vmatpush.msra.mxu2 %v242_v19 }
  0xa4   :  { %v137_v28 = vadd.f32 %v136_v26, %v135_v23  ;;  %v138_v29 = vmul.f32 0.125, %v130_v25  ;;  %v240_v23 = vld [vmem:[#allocation10 + $0x8] sm:$0xff]  ;;  %v239_v25 = vld [vmem:[#allocation10] sm:$0xff] }
  0xa5   :  { %272 = vmatpush.msra.mxu2 %v241_v20 }
  0xa6   :  { %v139_v32 = vmul.f32 0.125, %v137_v28  ;;  %v140_v33 = vmul.f32 %v138_v29, %v138_v29 }
  0xa7   :  { %273 = vmatpush.msra.mxu2 %v240_v23 }
  0xa8   :  { %v141_v35 = vsub.f32 %v139_v32, %v140_v33  ;;  %v218_v33 = vld [vmem:[#allocation8 + $0x2] sm:$0x1] }
  0xa9   :  { %274 = vmatpush.msra.mxu2 %v239_v25 }
  0xaa   :  { %v142_v37 = vmax.f32 %v141_v35, 0.0 }
  0xac   :  { %v145_v38 = vadd.f32 1e-05, %v142_v37  ;;  %v219_v37 = vld [vmem:[#allocation8 + $0x3] sm:$0x1] }
  0xae   :  { %309 = vrsqrt.f32 %v145_v38  ;;  %vm152_vm2 = vweird.f32 %v145_v38 }
  0xb4   :  { %v310_v39 = vpop.eup %309 }
  0xb5   :  { %v147_v40 = vmul.f32 %v310_v39, %v145_v38  ;;  %vm153_vm1 = vweird.f32 %v310_v39 }
  0xb6   :  { %vm154_vm3 = vmor %vm152_vm2, %vm153_vm1 }
  0xb7   :  { %v148_v41 = vmul.f32 %v310_v39, %v147_v40 }
  0xb9   :  { %v149_v42 = vmul.f32 0.5, %v148_v41 }
  0xbb   :  { %v150_v43 = vsub.f32 1.5, %v149_v42 }
  0xbd   :  { %v151_v45 = vmul.f32 %v310_v39, %v150_v43 }
  0xbf   :  { %v155_v46 = vsel %vm154_vm3, %v310_v39, %v151_v45  ;;  %v308_v45 = vld [vmem:[%s534_s5] ss:$0 sm:$0xff] }
  0xc0   :  { %v156_v47 = vmul.f32 %v155_v46, %v143_v44 }
  0xc2   :  { %v159_v49 = vperm.slane %v156_v47, 0  ;;  %v157_v50 = vmul.f32 %v156_v47, %v138_v29 }
  0xc4   :  { %v158_v51 = vsub.f32 %v144_v48, %v157_v50  ;;  %v160_v52 = vmul.f32 %v159_v49, %v122_v9 }
  0xc6   :  { %v161_v53 = vperm.slane %v158_v51, 0 }
  0xc8   :  { %v162_v54 = vadd.f32 %v161_v53, %v160_v52 }
  0xca   :  { %v163_v55 = vmax.f32 %v162_v54, 0.0 }
  0xcc   :  { %196 = vmatmul.f32.vlgmr.msra.gmra.mxu1 %v163_v55 }
 0x149   :  { %v197_v62 = vpop.f32.mrf.mxu1 }
 0x14a   :  { %v200_v63 = vrot.slane %v197_v62, 4  ;;  %v206_v0 = vmul.f32 %v197_v62, %v197_v62 }
 0x14c   :  { %v201_v2 = vadd.f32 %v200_v63, %v197_v62  ;;  %v207_v3 = vrot.slane %v206_v0, 4 }
 0x14e   :  { %v202_v5 = vrot.slane %v201_v2, 2  ;;  %v208_v6 = vadd.f32 %v207_v3, %v206_v0 }
 0x150   :  { %v203_v8 = vadd.f32 %v202_v5, %v201_v2  ;;  %v209_v9 = vrot.slane %v208_v6, 2 }
 0x152   :  { %v204_v11 = vrot.slane %v203_v8, 1  ;;  %v210_v12 = vadd.f32 %v209_v9, %v208_v6 }
 0x154   :  { %v205_v14 = vadd.f32 %v204_v11, %v203_v8  ;;  %v211_v15 = vrot.slane %v210_v12, 1 }
 0x156   :  { %v212_v17 = vadd.f32 %v211_v15, %v210_v12  ;;  %v213_v18 = vmul.f32 0.125, %v205_v14 }
 0x158   :  { %v214_v21 = vmul.f32 0.125, %v212_v17  ;;  %v215_v22 = vmul.f32 %v213_v18, %v213_v18 }
 0x15a   :  { %v216_v24 = vsub.f32 %v214_v21, %v215_v22 }
 0x15c   :  { %v217_v26 = vmax.f32 %v216_v24, 0.0 }
 0x15e   :  { %v220_v27 = vadd.f32 1e-05, %v217_v26 }
 0x160   :  { %311 = vrsqrt.f32 %v220_v27  ;;  %vm227_vm5 = vweird.f32 %v220_v27 }
 0x166   :  { %v312_v28 = vpop.eup %311 }
 0x167   :  { %v222_v29 = vmul.f32 %v312_v28, %v220_v27  ;;  %vm228_vm4 = vweird.f32 %v312_v28 }
 0x168   :  { %vm229_vm6 = vmor %vm227_vm5, %vm228_vm4 }
 0x169   :  { %v223_v30 = vmul.f32 %v312_v28, %v222_v29 }
 0x16b   :  { %v224_v31 = vmul.f32 0.5, %v223_v30 }
 0x16d   :  { %v225_v32 = vsub.f32 1.5, %v224_v31 }
 0x16f   :  { %v226_v34 = vmul.f32 %v312_v28, %v225_v32 }
 0x171   :  { %v230_v35 = vsel %vm229_vm6, %v312_v28, %v226_v34 }
 0x172   :  { %v231_v36 = vmul.f32 %v230_v35, %v218_v33 }
 0x174   :  { %v234_v38 = vperm.slane %v231_v36, 0  ;;  %v232_v39 = vmul.f32 %v231_v36, %v213_v18 }
 0x176   :  { %v233_v40 = vsub.f32 %v219_v37, %v232_v39  ;;  %v235_v41 = vmul.f32 %v234_v38, %v197_v62 }
 0x178   :  { %v236_v42 = vperm.slane %v233_v40, 0 }
 0x17a   :  { %v237_v43 = vadd.f32 %v236_v42, %v235_v41 }
 0x17c   :  { %v238_v44 = vmax.f32 %v237_v43, 0.0 }
 0x17e   :  { %275 = vmatmul.f32.vlgmr.msra.gmra.mxu2 %v238_v44 }
 0x201   :  { %v276_v46 = vpop.f32.mrf.mxu2 }
 0x202   :  { %v277_v47 = vadd.f32 %v308_v45, %v276_v46 }
 0x204   :  { %279 = vst [vmem:[#allocation11] sm:$0xff] %v277_v47 }
 0x205   :  { %290 = dma.vmem_to_hbm [thread:$0]  %s286_s22, 128, %s288_s25, [#allocation4]  }
 0x206   :  { %463 = dma.done.wait [#allocation4], 128  }
 0x207   :  { %464 = vsyncadd [#allocation4], 4294967168 }
 0x208   :  { %295 = vsyncpa [#allocation3], 1 }
 0x209   :  { %296 = vsyncpa [#allocation6], 1 }
 0x20a   :  { %297 = vsyncpa [#allocation9], 1 }
 0x20b   :  { %298 = vsyncpa [#allocation4], 1 }

</bundles_post_ra>
